<compile_context>
chip_gen: v5e
topology: v5e:2x2
jax: 0.10.0
libtpu: 0.0.40
codegen_flags: <defaults>
</compile_context>

<pallas_src>
import jax
import jax.numpy as jnp
from jax.experimental import pallas as pl
from jax.experimental.pallas import tpu as pltpu

_LANES = 128
_SUB = 8
_NCHUNK = 2        # outer "parallel" axis -> both TensorCores on v7x
_TR_MAX = 4096     # rows per block: 4096*128*4B = 2 MiB f32 per input block


def focal_loss(pred, mask, gamma=2.0, alpha=0.25):
    """pred, mask: [B, 1, H, W] (any float dtype; bf16 inputs halve HBM traffic)."""
    assert pred.shape == mask.shape, "pred and mask should have the same shape."
    n_elems = 1
    for d in pred.shape:
        n_elems *= int(d)

    # ---- lane-dense slab + padding to a whole number of (TR, 128) blocks ----
    rows_needed = -(-n_elems // _LANES)
    rows_per_chunk = -(-rows_needed // _NCHUNK)
    tr = min(_TR_MAX, ((rows_per_chunk + _SUB - 1) // _SUB) * _SUB)
    tr = max(tr, _SUB)
    inner = -(-rows_per_chunk // tr)            # reduction steps per chunk
    rows = _NCHUNK * inner * tr
    n_pad = rows * _LANES - n_elems

    pred_flat = pred.reshape(-1)
    mask_flat = mask.reshape(-1)
    if n_pad:
        # pred pad -100 => sigmoid == 0 exactly => both focal terms are 0.
        pred_flat = jnp.pad(pred_flat, (0, n_pad), constant_values=-100.0)
        mask_flat = jnp.pad(mask_flat, (0, n_pad), constant_values=0.0)
    p2 = pred_flat.reshape(rows, _LANES)
    m2 = mask_flat.reshape(rows, _LANES)

    def kernel(p_ref, m_ref, loss_acc_ref, npos_acc_ref):
        # Inner grid axis (axis 1) is the reduction axis: the output blocks are
        # resident accumulators across it.
        @pl.when(pl.program_id(1) == 0)
        def _():
            loss_acc_ref[...] = jnp.zeros_like(loss_acc_ref)
            npos_acc_ref[...] = jnp.zeros_like(npos_acc_ref)

        x = p_ref[...].astype(jnp.float32)
        m = m_ref[...].astype(jnp.float32)

        # sigmoid(x) == 0.5 * (tanh(x/2) + 1): one EUP op per vreg.
        p = 0.5 * (jnp.tanh(0.5 * x) + 1.0)
        one_m_p = 1.0 - p
        if gamma == 2.0:
            w_pos = one_m_p * one_m_p
            w_neg = p * p
        else:
            w_pos = jnp.power(one_m_p, gamma)
            w_neg = jnp.power(p, gamma)

        loss_pos = (-alpha) * m * w_pos * jnp.log(p + 1e-12)
        loss_neg = (alpha - 1.0) * (1.0 - m) * w_neg * jnp.log(one_m_p + 1e-12)
        term = loss_pos + loss_neg                       # (TR, 128)

        nsub = term.shape[0] // _SUB
        if nsub == 1:
            loss_acc_ref[...] += term
            npos_acc_ref[...] += m
        else:
            # Pure-VALU fold of the block into the (8, 128) accumulator
            # (reshape keeps the (8,128) tile layout; no XLU in the hot loop).
            loss_acc_ref[...] += jnp.sum(
                term.reshape(nsub, _SUB, _LANES), axis=0)
            npos_acc_ref[...] += jnp.sum(
                m.reshape(nsub, _SUB, _LANES), axis=0)

    loss_part, npos_part = pl.pallas_call(
        kernel,
        out_shape=(
            jax.ShapeDtypeStruct((_NCHUNK * _SUB, _LANES), jnp.float32),
            jax.ShapeDtypeStruct((_NCHUNK * _SUB, _LANES), jnp.float32),
        ),
        grid=(_NCHUNK, inner),
        in_specs=[
            pl.BlockSpec((tr, _LANES), lambda c, i: (c * inner + i, 0)),
            pl.BlockSpec((tr, _LANES), lambda c, i: (c * inner + i, 0)),
        ],
        out_specs=(
            pl.BlockSpec((_SUB, _LANES), lambda c, i: (c, 0)),
            pl.BlockSpec((_SUB, _LANES), lambda c, i: (c, 0)),
        ),
        compiler_params=pltpu.CompilerParams(
            dimension_semantics=("parallel", "arbitrary"),
            vmem_limit_bytes=32 * 1024 * 1024,
        ),
    )(p2, m2)

    # Tiny epilogue in plain JAX: one reduce over (2*8, 128) + a scalar ratio.
    sum_loss = jnp.sum(loss_part)
    num_pos = jnp.sum(npos_part)
    num_neg = jnp.asarray(float(n_elems), jnp.float32) - num_pos
    return sum_loss / (num_pos + num_neg + 1e-12)


def _reference(pred, mask, gamma=2.0, alpha=0.25):
    p = jax.nn.sigmoid(pred.astype(jnp.float32))
    m = mask.astype(jnp.float32)
    num_pos = jnp.sum(m)
    num_neg = m.size - num_pos
    w_pos = (1.0 - p) ** gamma
    w_neg = p ** gamma
    loss_pos = -alpha * m * w_pos * jnp.log(p + 1e-12)
    loss_neg = -(1.0 - alpha) * (1.0 - m) * w_neg * jnp.log(1.0 - p + 1e-12)
    return (jnp.sum(loss_pos) + jnp.sum(loss_neg)) / (num_pos + num_neg + 1e-12)


if __name__ == "__main__":
    key = jax.random.PRNGKey(0)
    k1, k2 = jax.random.split(key, 2)

    B, C, H, W = 2, 1, 16, 16
    pred = jax.random.normal(k1, (B, C, H, W), dtype=jnp.float32)
    mask = (jax.random.uniform(k2, (B, C, H, W)) > 0.5).astype(jnp.float32)

    loss = jax.jit(focal_loss)(pred, mask)
    loss = jax.block_until_ready(loss)

    ref = _reference(pred, mask)
    assert jnp.allclose(loss, ref, rtol=1e-5, atol=1e-6), (loss, ref)

    print("KERNEL_OK")
</pallas_src>

<mosaic_0001>
module attributes {stable_mosaic.version = 11 : i64} {
  func.func @kernel(%arg0: i32, %arg1: i32, %arg2: memref<8x128xf32, #tpu.memory_space<vmem>>, %arg3: memref<8x128xf32, #tpu.memory_space<vmem>>, %arg4: memref<8x128xf32, #tpu.memory_space<vmem>>, %arg5: memref<8x128xf32, #tpu.memory_space<vmem>>) attributes {dimension_semantics = [#tpu.dimension_semantics<parallel>, #tpu.dimension_semantics<arbitrary>], iteration_bounds = array<i64: 2, 1>, scalar_prefetch = 0 : i64, scratch_operands = 0 : i64, tpu.core_type = #tpu.core_type<tc>, window_params = [{transform_indices = @transform_0, window_bounds = array<i64: 8, 128>}, {transform_indices = @transform_1, window_bounds = array<i64: 8, 128>}, {transform_indices = @transform_2, window_bounds = array<i64: 8, 128>}, {transform_indices = @transform_3, window_bounds = array<i64: 8, 128>}]} {
    %c0_i32 = arith.constant 0 : i32
    %0 = arith.cmpi eq, %arg1, %c0_i32 : i32
    %1 = arith.extui %0 : i1 to i32
    %c0_i32_0 = arith.constant 0 : i32
    %2 = arith.cmpi ne, %1, %c0_i32_0 : i32
    scf.if %2 {
      %cst_20 = arith.constant 0.000000e+00 : f32
      %39 = vector.broadcast %cst_20 : f32 to vector<8x128xf32>
      %c0_21 = arith.constant 0 : index
      %c0_22 = arith.constant 0 : index
      %40 = vector.load %arg4[%c0_21, %c0_22] : memref<8x128xf32, #tpu.memory_space<vmem>>, vector<8x128xf32>
      tpu.vector_store %arg4[%c0_21, %c0_22], %39 {strides = array<i32>} : memref<8x128xf32, #tpu.memory_space<vmem>>, vector<8x128xf32>,
      %cst_23 = arith.constant 0.000000e+00 : f32
      %41 = vector.broadcast %cst_23 : f32 to vector<8x128xf32>
      %c0_24 = arith.constant 0 : index
      %c0_25 = arith.constant 0 : index
      %42 = vector.load %arg5[%c0_24, %c0_25] : memref<8x128xf32, #tpu.memory_space<vmem>>, vector<8x128xf32>
      tpu.vector_store %arg5[%c0_24, %c0_25], %41 {strides = array<i32>} : memref<8x128xf32, #tpu.memory_space<vmem>>, vector<8x128xf32>,
    } else {
    }
    %c0 = arith.constant 0 : index
    %c0_1 = arith.constant 0 : index
    %3 = vector.load %arg2[%c0, %c0_1] : memref<8x128xf32, #tpu.memory_space<vmem>>, vector<8x128xf32>
    %c0_2 = arith.constant 0 : index
    %c0_3 = arith.constant 0 : index
    %4 = vector.load %arg3[%c0_2, %c0_3] : memref<8x128xf32, #tpu.memory_space<vmem>>, vector<8x128xf32>
    %cst = arith.constant 5.000000e-01 : f32
    %5 = vector.broadcast %cst : f32 to vector<8x128xf32>
    %6 = arith.mulf %5, %3 : vector<8x128xf32>
    %7 = math.tanh %6 : vector<8x128xf32>
    %cst_4 = arith.constant 1.000000e+00 : f32
    %8 = vector.broadcast %cst_4 : f32 to vector<8x128xf32>
    %9 = arith.addf %7, %8 : vector<8x128xf32>
    %cst_5 = arith.constant 5.000000e-01 : f32
    %10 = vector.broadcast %cst_5 : f32 to vector<8x128xf32>
    %11 = arith.mulf %10, %9 : vector<8x128xf32>
    %cst_6 = arith.constant 1.000000e+00 : f32
    %12 = vector.broadcast %cst_6 : f32 to vector<8x128xf32>
    %13 = arith.subf %12, %11 : vector<8x128xf32>
    %14 = arith.mulf %13, %13 : vector<8x128xf32>
    %15 = arith.mulf %11, %11 : vector<8x128xf32>
    %cst_7 = arith.constant -2.500000e-01 : f32
    %16 = vector.broadcast %cst_7 : f32 to vector<8x128xf32>
    %17 = arith.mulf %16, %4 : vector<8x128xf32>
    %18 = arith.mulf %17, %14 : vector<8x128xf32>
    %cst_8 = arith.constant 9.99999996E-13 : f32
    %19 = vector.broadcast %cst_8 : f32 to vector<8x128xf32>
    %20 = arith.addf %11, %19 : vector<8x128xf32>
    %21 = math.log %20 : vector<8x128xf32>
    %22 = arith.mulf %18, %21 : vector<8x128xf32>
    %cst_9 = arith.constant 1.000000e+00 : f32
    %23 = vector.broadcast %cst_9 : f32 to vector<8x128xf32>
    %24 = arith.subf %23, %4 : vector<8x128xf32>
    %cst_10 = arith.constant -7.500000e-01 : f32
    %25 = vector.broadcast %cst_10 : f32 to vector<8x128xf32>
    %26 = arith.mulf %25, %24 : vector<8x128xf32>
    %27 = arith.mulf %26, %15 : vector<8x128xf32>
    %cst_11 = arith.constant 9.99999996E-13 : f32
    %28 = vector.broadcast %cst_11 : f32 to vector<8x128xf32>
    %29 = arith.addf %13, %28 : vector<8x128xf32>
    %30 = math.log %29 : vector<8x128xf32>
    %31 = arith.mulf %27, %30 : vector<8x128xf32>
    %32 = arith.addf %22, %31 : vector<8x128xf32>
    %c0_12 = arith.constant 0 : index
    %c0_13 = arith.constant 0 : index
    %33 = vector.load %arg4[%c0_12, %c0_13] : memref<8x128xf32, #tpu.memory_space<vmem>>, vector<8x128xf32>
    %34 = arith.addf %33, %32 : vector<8x128xf32>
    %c0_14 = arith.constant 0 : index
    %c0_15 = arith.constant 0 : index
    %35 = vector.load %arg4[%c0_14, %c0_15] : memref<8x128xf32, #tpu.memory_space<vmem>>, vector<8x128xf32>
    tpu.vector_store %arg4[%c0_14, %c0_15], %34 {strides = array<i32>} : memref<8x128xf32, #tpu.memory_space<vmem>>, vector<8x128xf32>,
    %c0_16 = arith.constant 0 : index
    %c0_17 = arith.constant 0 : index
    %36 = vector.load %arg5[%c0_16, %c0_17] : memref<8x128xf32, #tpu.memory_space<vmem>>, vector<8x128xf32>
    %37 = arith.addf %36, %4 : vector<8x128xf32>
    %c0_18 = arith.constant 0 : index
    %c0_19 = arith.constant 0 : index
    %38 = vector.load %arg5[%c0_18, %c0_19] : memref<8x128xf32, #tpu.memory_space<vmem>>, vector<8x128xf32>
    tpu.vector_store %arg5[%c0_18, %c0_19], %37 {strides = array<i32>} : memref<8x128xf32, #tpu.memory_space<vmem>>, vector<8x128xf32>,
    return
  }
  func.func @transform_0(%arg0: i32, %arg1: i32) -> (i32, i32) {
    %c1_i32 = arith.constant 1 : i32
    %0 = arith.muli %arg0, %c1_i32 : i32
    %1 = arith.addi %0, %arg1 : i32
    %c0_i32 = arith.constant 0 : i32
    %c0_i32_0 = arith.constant 0 : i32
    return %1, %c0_i32 : i32, i32
  }
  func.func @transform_1(%arg0: i32, %arg1: i32) -> (i32, i32) {
    %c1_i32 = arith.constant 1 : i32
    %0 = arith.muli %arg0, %c1_i32 : i32
    %1 = arith.addi %0, %arg1 : i32
    %c0_i32 = arith.constant 0 : i32
    %c0_i32_0 = arith.constant 0 : i32
    return %1, %c0_i32 : i32, i32
  }
  func.func @transform_2(%arg0: i32, %arg1: i32) -> (i32, i32) {
    %c0_i32 = arith.constant 0 : i32
    %c0_i32_0 = arith.constant 0 : i32
    return %arg0, %c0_i32 : i32, i32
  }
  func.func @transform_3(%arg0: i32, %arg1: i32) -> (i32, i32) {
    %c0_i32 = arith.constant 0 : i32
    %c0_i32_0 = arith.constant 0 : i32
    return %arg0, %c0_i32 : i32, i32
  }
}

</mosaic_0001>

<bundles_post_ra>
// kernel: focal_loss.1
= control target key start
LH: loop header
LB: loop body
LE: loop exit
PB: predicated region body
PF: predicated region fallthrough
CT: control target
= control target key end

     0   :  { %s445_s12 = smov 0   ;;  %s447_s13 = smov 0   ;;  %s490_s0 = inlined_call_operand.vmem [shape: f32[16,128], index: 0, kind: input, shape index: {}]   ;;  %s491_s1 = inlined_call_operand.vmem [shape: f32[16,128], index: 1, kind: input, shape index: {}]   ;;  %s492_s2 = inlined_call_operand.vmem [shape: f32[16,128], index: 2, kind: output, shape index: {0}]   ;;  %s493_s3 = inlined_call_operand.vmem [shape: f32[16,128], index: 3, kind: output, shape index: {1}]  }
   0x1   :  { %s449_s14 = smov 0  }
   0x2 LB: > { %s26_s15 = sadd.s32 1, %s419_s13  ;;  %p363_p0 = scmp.ge.s32.totalorder %s423_s14, 1  ;;  %s423_s14 = sphi %s449_s14, %s14_s14   ;;  %s419_s13 = sphi %s447_s13, %s495_s13   ;;  %s415_s12 = sphi %s445_s12, %s494_s12  }
   0x3   : > { %p28_p1 = scmp.ge.s32.totalorder %s26_s15, 2  ;;  %p168_p2 = scmp.lt.s32.totalorder %s423_s14, 3 }
   0x5   : > { %s497_s15 = smov (%p28_p1, %s26_s15), 0  ;;  %p169_p3 = pnand %p363_p0, %p168_p2 }
   0x6   : > { %p201_p4 = scmp.lt.s32.totalorder (!%p169_p3), %s415_s12, 1 }
   0x7   : > { %172 = sbr.rel (%p169_p3) target bundleno = 47 (0x2f), region = 28 }
   0xc   : > { %s499_s12 = smov (!%p201_p4, %s415_s12), 1 }
   0xd   : > { %s463_s16 = sshll.u32 %s499_s12, 3 }
   0xe   : > { %s204_s19 = scalar_lea.vmem %s490_s0, %s463_s16  ;;  %s210_s22 = scalar_lea.vmem %s491_s1, %s463_s16 }
   0xf   : > { %v226_v0 = vld [vmem:[%s204_s19] sm:$0xff]  ;;  %s219_s25 = scalar_lea.vmem %s493_s3, %s463_s16  ;;  %s215_s28 = scalar_lea.vmem %s492_s2, %s463_s16 }
  0x10   : > { %v227_v1 = vld [vmem:[%s210_s22] sm:$0xff]  ;;  %v228_v2 = vmul.f32 0.5, %v226_v0 }
  0x11   : > { %254 = vst [vmem:[%s219_s25] sm:$0xff] %v227_v1  ;;  %v241_v8 = vsub.f32 1.0, %v227_v1  ;;  %v235_v10 = vmul.f32 -0.25, %v227_v1 }
  0x12   : > { %395 = vtanh.f32 %v228_v2 }
  0x13   : > { %v242_v13 = vmul.f32 -0.75, %v241_v8 }
  0x18   : > { %v396_v3 = vpop.eup %395 }
  0x19   : > { %v230_v4 = vadd.f32 1.0, %v396_v3 }
  0x1b   : > { %v231_v5 = vmul.f32 0.5, %v230_v4 }
  0x1d   : > { %v232_v6 = vsub.f32 1.0, %v231_v5  ;;  %v237_v7 = vadd.f32 1e-12, %v231_v5  ;;  %v234_v12 = vmul.f32 %v231_v5, %v231_v5 }
  0x1f   : > { %397 = vlog2.f32 %v237_v7  ;;  %v244_v9 = vadd.f32 1e-12, %v232_v6  ;;  %v233_v11 = vmul.f32 %v232_v6, %v232_v6  ;;  %v243_v17 = vmul.f32 %v242_v13, %v234_v12 }
  0x21   : > { %399 = vlog2.f32 %v244_v9  ;;  %v236_v14 = vmul.f32 %v235_v10, %v233_v11 }
  0x25   : > { %v398_v15 = vpop.eup %397 }
  0x26   : > { %v239_v16 = vmul.f32 0.6931472, %v398_v15 }
  0x27   : > { %v400_v18 = vpop.eup %399 }
  0x28   : > { %v240_v19 = vmul.f32 %v239_v16, %v236_v14  ;;  %v246_v20 = vmul.f32 0.6931472, %v400_v18 }
  0x2a   : > { %v247_v21 = vmul.f32 %v246_v20, %v243_v17 }
  0x2c   : > { %v248_v22 = vadd.f32 %v247_v21, %v240_v19 }
  0x2e   : > { %251 = vst [vmem:[%s215_s28] sm:$0xff] %v248_v22 }
  0x2f PF: > { %s14_s14 = sadd.s32 1, %s423_s14   ;;  %s494_s12 = smov %s419_s13 }
  0x30   : > { %p11_p5 = scmp.ge.s32.totalorder %s14_s14, 4   ;;  %s495_s13 = smov %s497_s15 }
  0x32   :  { %13 = sbr.rel (!%p11_p5) target bundleno = 2 (0x2), region = 77 }

</bundles_post_ra>
